<compile_context>
chip_gen: v6e
topology: v6e:2x2x1
jax: 0.10.0
libtpu: 0.0.40
codegen_flags: <defaults>
</compile_context>

<pallas_src>
import functools

import jax
import jax.numpy as jnp
from jax.experimental import pallas as pl
from jax.experimental.pallas import tpu as pltpu


# ----------------------------------------------------------------------------- helpers
def _round_up(v, m):
    return ((v + m - 1) // m) * m


def _pad_last(a, target):
    pad = target - a.shape[-1]
    if pad == 0:
        return a
    widths = [(0, 0)] * (a.ndim - 1) + [(0, pad)]
    return jnp.pad(a, widths)


def _vmem_limit_bytes():
    # Generation-aware VMEM budget: ~60% of physical capacity (v5e/v6e 128 MiB -> ~76 MiB,
    # v7x 64 MiB -> ~38 MiB).  Conservative fallback if the query is unavailable.
    try:
        cap = pltpu.get_tpu_info().vmem_capacity_bytes
        return int(cap) * 3 // 5
    except Exception:
        return 48 * 1024 * 1024


def _finish(y, b_ref, use_bias, normalize):
    """bias add + L2 normalize (matches F.normalize(y, p=2, dim=2)), all in f32."""
    if use_bias:
        y = y + b_ref[...].astype(jnp.float32)
    if normalize:
        ssq = jnp.sum(y * y, axis=-1, keepdims=True)
        # y / max(||y||, 1e-12)  ==  y * rsqrt(max(||y||^2, 1e-24))
        y = y * jax.lax.rsqrt(jnp.maximum(ssq, 1e-24))
    return y


# ----------------------------------------------------------------------------- fused small-graph kernel
def _graphconv_fused_kernel(adj_ref, x_ref, w_ref, b_ref, out_ref, *,
                            nb, nodes, add_self, use_bias, normalize, xw_first):
    # adj_ref: (nb, Lp, Lp)  x_ref: (nb, Lp, dinp)  w_ref: (dinp, doutp)  b_ref: (1, doutp)
    adj = adj_ref[...]
    if xw_first:
        # xw = x @ W first (cheaper when doutp <= dinp); one MXU-shaped (nb*Lp, dinp) matmul.
        x2d = x_ref[...].reshape(nb * nodes, -1)
        xw = jnp.dot(x2d, w_ref[...], preferred_element_type=jnp.float32)
        xw_c = xw.reshape(nb, nodes, -1).astype(adj.dtype)
        y = jnp.einsum("bij,bjd->bid", adj, xw_c,
                       preferred_element_type=jnp.float32)
        if add_self:
            y = y + xw_c.astype(jnp.float32)          # exactly (adj + I) @ xw_c
    else:
        # (adj @ x) @ W ordering (cheaper when doutp > dinp).
        x = x_ref[...]
        ax = jnp.einsum("bij,bjd->bid", adj, x, preferred_element_type=jnp.float32)
        if add_self:
            ax = ax + x.astype(jnp.float32)
        ax2d = ax.astype(adj.dtype).reshape(nb * nodes, -1)
        y = jnp.dot(ax2d, w_ref[...],
                    preferred_element_type=jnp.float32).reshape(nb, nodes, -1)
    y = _finish(y, b_ref, use_bias, normalize)
    out_ref[...] = y.astype(out_ref.dtype)


# ----------------------------------------------------------------------------- tiled kernels
def _tiled_xw_first_kernel(adj_ref, x_ref, w_ref, b_ref, out_ref, xw_scr, acc_ref, *,
                           tm, tk, add_self, use_bias, normalize):
    # grid = (batch, row-tile i, contraction-tile k); k last + resident f32 accumulator.
    # x_ref is the whole per-batch x (1, L, dinp), resident in VMEM; sliced with pl.ds.
    i = pl.program_id(1)
    k = pl.program_id(2)
    k_off = pl.multiple_of(k * tk, tk)

    # At the first row-tile of each batch, compute this k-tile of xw = x @ W once and stash
    # it in VMEM scratch; all later row-tiles re-use it (no xw HBM round trip at all).
    @pl.when(i == 0)
    def _compute_xw_tile():
        xk = x_ref[0, pl.ds(k_off, tk), :]
        xw_scr[pl.ds(k_off, tk), :] = jnp.dot(
            xk, w_ref[...], preferred_element_type=jnp.float32).astype(xw_scr.dtype)

    @pl.when(k == 0)
    def _init():
        acc_ref[...] = jnp.zeros_like(acc_ref)

    acc_ref[...] += jnp.dot(adj_ref[0], xw_scr[pl.ds(k_off, tk), :],
                            preferred_element_type=jnp.float32)

    @pl.when(k == pl.num_programs(2) - 1)
    def _finalize():
        y = acc_ref[...]
        if add_self:
            i_off = pl.multiple_of(i * tm, tm)
            y = y + xw_scr[pl.ds(i_off, tm), :].astype(jnp.float32)  # the "+ I @ xw" term
        y = _finish(y, b_ref, use_bias, normalize)
        out_ref[0] = y.astype(out_ref.dtype)


def _tiled_x_first_kernel(adj_ref, x_ref, w_ref, b_ref, out_ref, acc_ref, *,
                          tm, tk, add_self, use_bias, normalize):
    # Ordering for doutp > dinp: accumulate (adj @ x) over dinp, apply W at finalize.
    i = pl.program_id(1)
    k = pl.program_id(2)
    k_off = pl.multiple_of(k * tk, tk)

    @pl.when(k == 0)
    def _init():
        if add_self:
            i_off = pl.multiple_of(i * tm, tm)
            acc_ref[...] = x_ref[0, pl.ds(i_off, tm), :].astype(jnp.float32)  # seed "+ x"
        else:
            acc_ref[...] = jnp.zeros_like(acc_ref)

    acc_ref[...] += jnp.dot(adj_ref[0], x_ref[0, pl.ds(k_off, tk), :],
                            preferred_element_type=jnp.float32)

    @pl.when(k == pl.num_programs(2) - 1)
    def _finalize():
        y = jnp.dot(acc_ref[...], w_ref[...].astype(jnp.float32),
                    preferred_element_type=jnp.float32)
        y = _finish(y, b_ref, use_bias, normalize)
        out_ref[0] = y.astype(out_ref.dtype)


# ----------------------------------------------------------------------------- wrapper
def graph_conv_forward(x, adj, weight, bias=None, *, add_self=False,
                       normalize_embedding=False, compute_dtype=jnp.bfloat16,
                       block_m=None, block_k=None, batch_block=None,
                       fused_nodes_limit=512, return_padded=False):
    """x: [N, L, Din], adj: [N, L, L], weight: [Din, Dout], bias: [Dout] or None.

    compute_dtype defaults to bf16 (halves the HBM-bound adjacency stream); accumulation,
    bias add and the L2 normalize are always f32.  For the full bandwidth win pass adj/x
    already in bf16 — otherwise the one-off f32->bf16 cast is an extra pass outside the kernel.
    """
    N, L, Din = x.shape
    Dout = weight.shape[1]
    use_bias = bias is not None
    compute_dtype = jnp.dtype(compute_dtype)
    itemsize = compute_dtype.itemsize

    # Lane-dense padding of feature dims (zero columns leave bias add and the L2 norm over
    # dim=2 unchanged; output is sliced back at the end unless return_padded).
    dinp = _round_up(Din, 128)
    doutp = _round_up(Dout, 128)
    xw_first = doutp <= dinp   # contract adj against the narrower feature width

    x_p = _pad_last(x.astype(jnp.float32), dinp).astype(compute_dtype)
    w_p = jnp.pad(weight.astype(jnp.float32),
                  ((0, dinp - Din), (0, doutp - Dout))).astype(compute_dtype)
    adj_c = adj if adj.dtype == compute_dtype else adj.astype(compute_dtype)
    if use_bias:
        b_p = _pad_last(bias.astype(jnp.float32), doutp).reshape(1, doutp)
    else:
        b_p = jnp.zeros((1, doutp), jnp.float32)

    vmem_limit = _vmem_limit_bytes()
    tiled = (block_m is not None) or (block_k is not None) or (L > fused_nodes_limit)

    if not tiled:
        # ----------------------- fused path: several whole graphs per grid step -----------------
        # Sublane-align L so the in-kernel (nb, L, D) <-> (nb*L, D) reshapes are layout-free.
        sub = 8 if itemsize == 4 else 16
        Lp = _round_up(L, sub)
        if Lp != L:
            x_p = jnp.pad(x_p, ((0, 0), (0, Lp - L), (0, 0)))
            adj_c = jnp.pad(adj_c, ((0, 0), (0, Lp - L), (0, Lp - L)))

        if batch_block is None:
            # VMEM/graph: double-buffered adj/x/out streams + f32 intermediates + cast copy.
            per_graph = (2 * (Lp * Lp + Lp * dinp) * itemsize
                         + 2 * Lp * doutp * 4
                         + Lp * (dinp + doutp) * 4
                         + Lp * max(dinp, doutp) * itemsize)
            budget = min(vmem_limit // 4, 16 * 1024 * 1024)
            nb_cap = max(1, budget // max(per_graph, 1))
            if N >= 2:
                nb_cap = min(nb_cap, N // 2)   # keep >= 2 grid steps so v7x's 2nd TC has work
            nb = 1
            for cand in range(min(N, nb_cap), 0, -1):
                if N % cand == 0:
                    nb = cand
                    break
        else:
            nb = batch_block
            assert N % nb == 0, "batch_block must divide the batch size"

        kernel = functools.partial(_graphconv_fused_kernel, nb=nb, nodes=Lp,
                                   add_self=add_self, use_bias=use_bias,
                                   normalize=normalize_embedding, xw_first=xw_first)
        d_small = doutp if xw_first else dinp
        cost = pl.CostEstimate(
            flops=2 * N * Lp * Lp * d_small + 2 * N * Lp * dinp * doutp,
            transcendentals=N * Lp if normalize_embedding else 0,
            bytes_accessed=(N * Lp * Lp + N * Lp * dinp + dinp * doutp) * itemsize
                           + doutp * 4 + N * Lp * doutp * 4)

        out = pl.pallas_call(
            kernel,
            out_shape=jax.ShapeDtypeStruct((N, Lp, doutp), jnp.float32),
            grid_spec=pltpu.PrefetchScalarGridSpec(
                num_scalar_prefetch=0,
                grid=(N // nb,),
                in_specs=[
                    pl.BlockSpec((nb, Lp, Lp), lambda b: (b, 0, 0)),      # adj
                    pl.BlockSpec((nb, Lp, dinp), lambda b: (b, 0, 0)),    # x
                    pl.BlockSpec((dinp, doutp), lambda b: (0, 0)),        # weight (resident)
                    pl.BlockSpec((1, doutp), lambda b: (0, 0)),           # bias   (resident)
                ],
                out_specs=pl.BlockSpec((nb, Lp, doutp), lambda b: (b, 0, 0)),
            ),
            compiler_params=pltpu.CompilerParams(
                dimension_semantics=("parallel",),
                vmem_limit_bytes=vmem_limit),
            cost_estimate=cost,
        )(adj_c, x_p, w_p, b_p)

        if Lp != L:
            out = out[:, :L, :]
        if doutp != Dout and not return_padded:
            out = out[..., :Dout]
        return out

    # --------------------------- tiled path: single fused kernel, L-scalable --------------------
    def _pick(n, cands):
        for c in cands:
            if n % c == 0:
                return c
        return n  # full extent is always legal under the (8,128) rule

    tm = block_m if block_m is not None else _pick(L, (512, 256, 128, 64, 32, 16, 8))
    tk = block_k if block_k is not None else _pick(L, (1024, 512, 256, 128))
    # v7x 2nd TensorCore: for the x-first order (row axis is parallel) make sure there are
    # at least 2 parallel grid points even when N == 1.
    if block_m is None and not xw_first and N * (L // tm) < 2:
        for c in (256, 128, 64, 32, 16, 8):
            if c < tm and L % c == 0:
                tm = c
                break
    assert L % tm == 0 and L % tk == 0, "block sizes must divide num_nodes"

    if xw_first:
        kernel = functools.partial(_tiled_xw_first_kernel, tm=tm, tk=tk,
                                   add_self=add_self, use_bias=use_bias,
                                   normalize=normalize_embedding)
        scratch = [pltpu.VMEM((L, doutp), compute_dtype),   # xw, computed once per batch
                   pltpu.VMEM((tm, doutp), jnp.float32)]    # accumulator
        # The i==0 pass fills the xw scratch for the batch -> i must stay sequential.
        semantics = ("parallel", "arbitrary", "arbitrary")
        # TODO(synk): with N == 1 this ordering exposes only 1 parallel unit on v7x.
    else:
        kernel = functools.partial(_tiled_x_first_kernel, tm=tm, tk=tk,
                                   add_self=add_self, use_bias=use_bias,
                                   normalize=normalize_embedding)
        scratch = [pltpu.VMEM((tm, dinp), jnp.float32)]     # accumulator
        semantics = ("parallel", "parallel", "arbitrary")

    d_small = doutp if xw_first else dinp
    cost = pl.CostEstimate(
        flops=2 * N * L * L * d_small + 2 * N * L * dinp * doutp,
        transcendentals=N * L if normalize_embedding else 0,
        bytes_accessed=(N * L * L + N * L * dinp + dinp * doutp) * itemsize
                       + doutp * 4 + N * L * doutp * 4)

    # TODO(synk): x is resident per batch (2 * L * dinp * itemsize VMEM); for extremely large
    #             L * Din switch the x operand back to streamed (1, tk, dinp) k-tiles.
    out = pl.pallas_call(
        kernel,
        out_shape=jax.ShapeDtypeStruct((N, L, doutp), jnp.float32),
        grid_spec=pltpu.PrefetchScalarGridSpec(
            num_scalar_prefetch=0,
            grid=(N, L // tm, L // tk),
            in_specs=[
                pl.BlockSpec((1, tm, tk), lambda b, i, k: (b, i, k)),    # adj tile (streamed)
                pl.BlockSpec((1, L, dinp), lambda b, i, k: (b, 0, 0)),   # x, resident per batch
                pl.BlockSpec((dinp, doutp), lambda b, i, k: (0, 0)),     # weight (resident)
                pl.BlockSpec((1, doutp), lambda b, i, k: (0, 0)),        # bias   (resident)
            ],
            out_specs=pl.BlockSpec((1, tm, doutp), lambda b, i, k: (b, i, 0)),
            scratch_shapes=scratch,
        ),
        compiler_params=pltpu.CompilerParams(
            dimension_semantics=semantics,
            vmem_limit_bytes=vmem_limit),
        cost_estimate=cost,
    )(adj_c, x_p, w_p, b_p)

    if doutp != Dout and not return_padded:
        out = out[..., :Dout]
    return out


# ----------------------------------------------------------------------------- reference + tests
def reference_forward(x, adj, weight, bias, add_self=False, normalize_embedding=False):
    hp = jax.lax.Precision.HIGHEST
    y = jnp.matmul(adj, x, precision=hp)
    if add_self:
        y = y + x
    y = jnp.matmul(y, weight, precision=hp)
    if bias is not None:
        y = y + bias
    if normalize_embedding:
        norm = jnp.maximum(jnp.linalg.norm(y, axis=2, keepdims=True), 1e-12)
        y = y / norm
    return y


def _check(out, ref, tol, tag):
    assert out.shape == ref.shape, f"{tag}: shape {out.shape} vs {ref.shape}"
    assert bool(jnp.allclose(out, ref, atol=tol, rtol=tol)), (
        f"{tag}: mismatch, max|diff|={float(jnp.max(jnp.abs(out - ref)))}")


def _make_inputs(key, N, L, Din, Dout):
    k1, k2, k3, k4 = jax.random.split(key, 4)
    x = jax.random.normal(k1, (N, L, Din), dtype=jnp.float32)
    a = jax.random.uniform(k2, (N, L, L), dtype=jnp.float32)
    adj = (a + jnp.swapaxes(a, 1, 2)) * 0.5 + jnp.eye(L, dtype=jnp.float32)
    w = jax.random.normal(k3, (Din, Dout), dtype=jnp.float32) * (1.0 / jnp.sqrt(Din))
    b = jax.random.normal(k4, (Dout,), dtype=jnp.float32) * 0.01
    return x, adj, w, b


if __name__ == "__main__":
    key = jax.random.PRNGKey(0)

    # --- A: small fused path, module defaults, default bf16 compute ----------------------------
    x, adj, w, b = _make_inputs(key, 2, 16, 32, 32)
    out = jax.block_until_ready(graph_conv_forward(x, adj, w, b))
    _check(out, reference_forward(x, adj, w, b), 1e-1, "fused-bf16-default")

    # --- B: small fused path, f32 compute, add_self + normalize --------------------------------
    out = jax.block_until_ready(
        graph_conv_forward(x, adj, w, b, add_self=True, normalize_embedding=True,
                           compute_dtype=jnp.float32))
    _check(out, reference_forward(x, adj, w, b, add_self=True, normalize_embedding=True),
           1e-2, "fused-f32-self-norm")

    # --- C: tiled path, xw-first ordering (Dout <= Din after padding), fused xw scratch --------
    x2, adj2, w2, _ = _make_inputs(key, 2, 256, 48, 32)
    out = jax.block_until_ready(
        graph_conv_forward(x2, adj2, w2, None, add_self=True, normalize_embedding=True,
                           compute_dtype=jnp.float32, block_m=128, block_k=128))
    _check(out, reference_forward(x2, adj2, w2, None, add_self=True, normalize_embedding=True),
           1e-2, "tiled-xw-first")

    # --- D: tiled path, x-first ordering (Dout > Din after padding) ----------------------------
    x3, adj3, w3, b3 = _make_inputs(key, 2, 256, 32, 160)
    out = jax.block_until_ready(
        graph_conv_forward(x3, adj3, w3, b3, compute_dtype=jnp.float32,
                           block_m=128, block_k=128))
    _check(out, reference_forward(x3, adj3, w3, b3), 2e-2, "tiled-x-first")

    # --- E: tiled path with default bf16 compute ------------------------------------------------
    x4, adj4, w4, b4 = _make_inputs(key, 2, 128, 64, 64)
    out = jax.block_until_ready(
        graph_conv_forward(x4, adj4, w4, b4, add_self=True, normalize_embedding=True,
                           block_m=64, block_k=128))
    _check(out, reference_forward(x4, adj4, w4, b4, add_self=True, normalize_embedding=True),
           1e-1, "tiled-bf16")

    # --- F: fused path with non-sublane-aligned L (row padding) --------------------------------
    x5, adj5, w5, b5 = _make_inputs(key, 2, 12, 8, 8)
    out = jax.block_until_ready(
        graph_conv_forward(x5, adj5, w5, b5, compute_dtype=jnp.float32))
    _check(out, reference_forward(x5, adj5, w5, b5), 1e-2, "fused-rowpad")

    print("KERNEL_OK")
</pallas_src>

<mosaic_0001>
module attributes {stable_mosaic.version = 11 : i64} {
  func.func @_graphconv_fused_kernel(%arg0: i32, %arg1: memref<1x16x16xbf16, #tpu.memory_space<vmem>>, %arg2: memref<1x16x128xbf16, #tpu.memory_space<vmem>>, %arg3: memref<128x128xbf16, #tpu.memory_space<vmem>>, %arg4: memref<1x128xf32, #tpu.memory_space<vmem>>, %arg5: memref<1x16x128xf32, #tpu.memory_space<vmem>>) attributes {dimension_semantics = [#tpu.dimension_semantics<parallel>], iteration_bounds = array<i64: 2>, scalar_prefetch = 0 : i64, scratch_operands = 0 : i64, tpu.core_type = #tpu.core_type<tc>, window_params = [{transform_indices = @transform_0, window_bounds = array<i64: 1, 16, 16>}, {transform_indices = @transform_1, window_bounds = array<i64: 1, 16, 128>}, {pipeline_mode = #tpu.pipeline_mode<synchronous>, transform_indices = @transform_2, window_bounds = array<i64: 128, 128>}, {pipeline_mode = #tpu.pipeline_mode<synchronous>, transform_indices = @transform_3, window_bounds = array<i64: 1, 128>}, {transform_indices = @transform_4, window_bounds = array<i64: 1, 16, 128>}]} {
    %c0 = arith.constant 0 : index
    %c0_0 = arith.constant 0 : index
    %c0_1 = arith.constant 0 : index
    %0 = vector.load %arg1[%c0, %c0_0, %c0_1] : memref<1x16x16xbf16, #tpu.memory_space<vmem>>, vector<1x16x16xbf16>
    %c0_2 = arith.constant 0 : index
    %c0_3 = arith.constant 0 : index
    %c0_4 = arith.constant 0 : index
    %1 = vector.load %arg2[%c0_2, %c0_3, %c0_4] : memref<1x16x128xbf16, #tpu.memory_space<vmem>>, vector<1x16x128xbf16>
    %2 = vector.shape_cast %1 : vector<1x16x128xbf16> to vector<16x128xbf16>
    %c0_5 = arith.constant 0 : index
    %c0_6 = arith.constant 0 : index
    %3 = vector.load %arg3[%c0_5, %c0_6] : memref<128x128xbf16, #tpu.memory_space<vmem>>, vector<128x128xbf16>
    %cst = arith.constant dense<0.000000e+00> : vector<16x128xf32>
    %4 = tpu.matmul %2, %3, %cst {dimension_numbers = #tpu.dot_dimension_numbers<[1], [0], [0], [1], [0, 0, 1, 1], [], []>} : vector<16x128xbf16>, vector<128x128xbf16>, vector<16x128xf32> -> vector<16x128xf32>
    %5 = vector.shape_cast %4 : vector<16x128xf32> to vector<1x16x128xf32>
    %6 = arith.truncf %5 : vector<1x16x128xf32> to vector<1x16x128xbf16>
    "tpu.trace_start"() <{level = 10 : i32, message = "bij,bjd->bid"}> : () -> ()
    %cst_7 = arith.constant dense<0.000000e+00> : vector<1x16x128xf32>
    %7 = tpu.matmul %0, %6, %cst_7 {dimension_numbers = #tpu.dot_dimension_numbers<[2], [1], [1], [2], [0, 0, 0, 1, 1, 2], [0], [0]>} : vector<1x16x16xbf16>, vector<1x16x128xbf16>, vector<1x16x128xf32> -> vector<1x16x128xf32>
    "tpu.trace_stop"() : () -> ()
    %c0_8 = arith.constant 0 : index
    %c0_9 = arith.constant 0 : index
    %8 = vector.load %arg4[%c0_8, %c0_9] : memref<1x128xf32, #tpu.memory_space<vmem>>, vector<1x128xf32>
    %9 = vector.shape_cast %8 : vector<1x128xf32> to vector<1x1x128xf32>
    %10 = vector.broadcast %9 : vector<1x1x128xf32> to vector<1x16x128xf32>
    %11 = arith.addf %7, %10 : vector<1x16x128xf32>
    %c0_10 = arith.constant 0 : index
    %c0_11 = arith.constant 0 : index
    %c0_12 = arith.constant 0 : index
    %12 = vector.load %arg5[%c0_10, %c0_11, %c0_12] : memref<1x16x128xf32, #tpu.memory_space<vmem>>, vector<1x16x128xf32>
    tpu.vector_store %arg5[%c0_10, %c0_11, %c0_12], %11 {strides = array<i32>} : memref<1x16x128xf32, #tpu.memory_space<vmem>>, vector<1x16x128xf32>,
    return
  }
  func.func @transform_0(%arg0: i32) -> (i32, i32, i32) {
    %c0_i32 = arith.constant 0 : i32
    %c0_i32_0 = arith.constant 0 : i32
    %c0_i32_1 = arith.constant 0 : i32
    return %arg0, %c0_i32, %c0_i32_0 : i32, i32, i32
  }
  func.func @transform_1(%arg0: i32) -> (i32, i32, i32) {
    %c0_i32 = arith.constant 0 : i32
    %c0_i32_0 = arith.constant 0 : i32
    %c0_i32_1 = arith.constant 0 : i32
    return %arg0, %c0_i32, %c0_i32_0 : i32, i32, i32
  }
  func.func @transform_2(%arg0: i32) -> (i32, i32) {
    %c0_i32 = arith.constant 0 : i32
    %c0_i32_0 = arith.constant 0 : i32
    %c0_i32_1 = arith.constant 0 : i32
    return %c0_i32, %c0_i32_0 : i32, i32
  }
  func.func @transform_3(%arg0: i32) -> (i32, i32) {
    %c0_i32 = arith.constant 0 : i32
    %c0_i32_0 = arith.constant 0 : i32
    %c0_i32_1 = arith.constant 0 : i32
    return %c0_i32, %c0_i32_0 : i32, i32
  }
  func.func @transform_4(%arg0: i32) -> (i32, i32, i32) {
    %c0_i32 = arith.constant 0 : i32
    %c0_i32_0 = arith.constant 0 : i32
    %c0_i32_1 = arith.constant 0 : i32
    return %arg0, %c0_i32, %c0_i32_0 : i32, i32, i32
  }
}

</mosaic_0001>

<bundles_post_ra>
// kernel: tpu_custom_call.1
= control target key start
LH: loop header
LB: loop body
LE: loop exit
PB: predicated region body
PF: predicated region fallthrough
CT: control target
= control target key end

     0   :  { %s1147_s0 = inlined_call_operand.hbm [shape: bf16[2,16,16], index: 0, kind: input, shape index: {}]   ;;  %s1148_s1 = inlined_call_operand.hbm [shape: bf16[2,16,128], index: 1, kind: input, shape index: {}]   ;;  %s1149_s2 = inlined_call_operand.hbm [shape: bf16[128,128], index: 2, kind: input, shape index: {}]   ;;  %s1150_s3 = inlined_call_operand.vmem [shape: f32[1,128], index: 3, kind: input, shape index: {}]   ;;  %s1151_s4 = inlined_call_operand.hbm [shape: f32[2,16,128], index: 4, kind: output, shape index: {}]  }
   0x1   :  { %1159 = sst [smem:[#allocation14_spill]] %s1147_s0 }
   0x2   :  { %1160 = sst [smem:[#allocation15_spill]] %s1149_s2 }
   0x3   :  { %9 = vsyncpa [#allocation3], 0 }
   0x4   :  { %11 = vsyncpa [#allocation3 + $0x1], 0 }
   0x5   :  { %12 = vsyncpa [#allocation6], 0 }
   0x6   :  { %14 = vsyncpa [#allocation6 + $0x1], 0 }
   0x7   :  { %15 = vsyncpa [#allocation4], 0 }
   0x8   :  { %17 = vsyncpa [#allocation4 + $0x1], 0  ;;  %s906_s15 = smov 0   ;;  %s908_s16 = smov 0  }
   0x9   :  { %s910_s17 = smov 0   ;;  %s912_s18 = smov 0  }
   0xa LB: > { %s927_s19 = sadd.s32 4294967295, %s869_s18   ;;  %s565_s20 = sadd.s32 4294967294, %s869_s18   ;;  %s869_s18 = sphi %s912_s18, %s1183_s18   ;;  %s865_s17 = sphi %s910_s17, %s1182_s17   ;;  %s861_s16 = sphi %s908_s16, %s1181_s16   ;;  %s857_s15 = sphi %s906_s15, %s1180_s15  }
   0xb   : > { %p43_p0 = scmp.ne.s32.totalorder %s861_s16, %s857_s15  ;;  %p1156_p1 = scmp.eq.s32.totalorder %s927_s19, 0 }
   0xc   : > { %p141_p3 = scmp.eq.s32.totalorder %s565_s20, 1  ;;  %p566_p5 = scmp.ge.s32.totalorder %s869_s18, 1 }
   0xd   : > { %p936_p4 = por %p1156_p1, %p43_p0  ;;  %p148_p7 = scmp.lt.s32.totalorder %s869_s18, 3 }
   0xe   : > { %p941_p6 = por %p141_p3, %p43_p0  ;;  %s871_s24 = smov [#allocation7]  }
   0xf   : > { %s1161_s21 = scalar_select %p936_p4, 1, 0 }
  0x10   : > { %s1162_s22 = scalar_select %p941_p6, 1, 0 }
  0x11   : > { %p946_p8 = pnand %p566_p5, %p148_p7  ;;  %s160_s25 = sshll.u32 %s871_s24, 4  ;;  %s161_s25 = int_to_ptr.vmem [resolvable:$true] %s160_s25 }
  0x12   : > { %s960_s27 = sadd.s32 1, %s869_s18   ;;  %s30_s28 = sadd.s32 1, %s865_s17 }
  0x13   : > { %p647_p9 = pneg %p946_p8  ;;  %s27_s29 = ssub.s32 %s869_s18, %s960_s27 }
  0x14   : > { %s726_s30 = scalar_lea.vmem %s161_s25, 1024  ;;  %p734_p5 = scmp.lt.s32.totalorder %s161_s25, %s161_s25 }
  0x15   : > { %p955_p11 = pnand %p647_p9, %p1156_p1  ;;  %p727_p13 = scmp.ne.s32.totalorder %s161_s25, %s726_s30 }
  0x16   : > { %p735_p7 = scmp.lt.s32.totalorder %s726_s30, %s726_s30 }
  0x17   : > { %p717_p12 = pneg %p955_p11 }
  0x18   : > { %p736_p10 = por %p735_p7, %p734_p5 }
  0x19   : > { %p729_p0 = pnand %p727_p13, %p717_p12 }
  0x1b   : > { %p730_p3 = pneg %p729_p0 }
  0x1d   : > { %p737_p2 = pnand %p736_p10, %p730_p3 }
  0x1f   : > { %740 = shalt.err (!%p737_p2)
}
  0x20   : > { %s1152_s5 = smov 64   ;;  %s1154_s6 = smov 4  }
  0x21   : > { %s1165_s2 = sld [smem:[#allocation15_spill]]  ;;  %p28_p2 = scmp.eq.s32.totalorder %s27_s29, 0 }
  0x22   : > { %p37_p9 = scmp.ne.s32.totalorder %s865_s17, %s861_s16  ;;  %p38_p10 = scmp.eq.s32.totalorder %s869_s18, 0 }
  0x23   : > { %p663_p12 = scmp.lt.s32.totalorder %s869_s18, 2  ;;  %p1167_p0 = scmp.eq.s32.totalorder %s927_s19, 1 }
  0x24   : > { %s980_s9 = scalar_select %p28_p2, %s865_s17, %s30_s28  }
  0x25   : > { %p39_p13 = por %p38_p10, %p37_p9  ;;  %p984_p3 = por %p1167_p0, %p37_p9 }
  0x26   : > { %1166 = sst [smem:[#allocation13_spill]] %s980_s9  ;;  %s177_s11 = sand.u32 1, %s865_s17  }
  0x27   : > { %650 = dma.hbm_to_vmem [thread:$0]  (!%p955_p11), %s1165_s2, 1024, %s161_s25, [#allocation6], %s1152_s5, %s1152_s5, %s1154_s6  }
  0x28   : > { %s1168_s10 = scalar_select %p984_p3, 1, 0 }
  0x29   : > { %s597_s12 = sshll.u32 %s869_s18, 7  ;;  %s990_s13 = sshll.u32 %s177_s11, 3 }
  0x2a   : > { %s1169_s0 = sld [smem:[#allocation14_spill]]  ;;  %s181_s25 = scalar_lea.vmem [#allocation2], %s990_s13 }
  0x2b   : > { %s188_s26 = sshll.u32 %s181_s25, 4  ;;  %p998_p11 = pnand %p663_p12, %p39_p13  ;;  %s1002_s26 = int_to_ptr.vmem [resolvable:$true] %s188_s26 }
  0x2c   : > { %s1007_s7 = scalar_lea.hbm %s1148_s1, %s597_s12  ;;  %s1009_s8 = scalar_lea.sflag [#allocation3], %s177_s11 }
  0x2d   : > { %p743_p7 = pneg %p998_p11 }
  0x30   : > { %s995_s24 = scalar_lea.hbm %s1169_s0, %s597_s12  ;;  %s746_s5 = scalar_lea.hbm %s1169_s0, 256 }
  0x31   : > { %s741_s14 = scalar_lea.hbm %s995_s24, 128  ;;  %p747_p10 = scmp.lt.s32.totalorder %s995_s24, %s1169_s0 }
  0x32   : > { %p742_p5 = scmp.ne.s32.totalorder %s995_s24, %s741_s14  ;;  %p748_p12 = scmp.lt.s32.totalorder %s746_s5, %s741_s14 }
  0x34   : > { %p744_p2 = pnand %p743_p7, %p742_p5  ;;  %p749_p13 = por %p748_p12, %p747_p10 }
  0x36   : > { %p745_p9 = pneg %p744_p2 }
  0x38   : > { %p750_p0 = pnand %p749_p13, %p745_p9 }
  0x3a   : > { %753 = shalt.err (!%p750_p0)
}
  0x3b   : > { %s754_s11 = scalar_lea.vmem %s1002_s26, 128  ;;  %s874_s12 = smov [#allocation2]  }
  0x3c   : > { %p755_p1 = scmp.ne.s32.totalorder %s1002_s26, %s754_s11  ;;  %s759_s29 = sshll.u32 %s874_s12, 4  ;;  %s760_s29 = int_to_ptr.vmem [resolvable:$false] %s759_s29 }
  0x3d   : > { %s761_s30 = scalar_lea.vmem %s760_s29, 256  ;;  %p762_p6 = scmp.lt.s32.totalorder %s1002_s26, %s760_s29 }
  0x3e   : > { %p757_p5 = pnand %p755_p1, %p743_p7  ;;  %p763_p3 = scmp.lt.s32.totalorder %s761_s30, %s754_s11 }
  0x40   : > { %p758_p2 = pneg %p757_p5  ;;  %p764_p4 = por %p763_p3, %p762_p6 }
  0x42   : > { %p765_p10 = pnand %p764_p4, %p758_p2 }
  0x44   : > { %768 = shalt.err (!%p765_p10)
}
  0x45   : > { %s1171_s2 = smov 4   ;;  %s1172_s5 = smov 64  }
  0x46   : > { %654 = dma.hbm_to_vmem [thread:$0]  (!%p998_p11), %s995_s24, 128, %s1002_s26, %s1009_s8, %s1172_s5, %s1172_s5, %s1171_s2  }
  0x47   : > { %s202_s6 = scalar_lea.vmem [#allocation5], %s990_s13  ;;  %s198_s20 = sand.u32 1, %s869_s18  }
  0x48   : > { %s209_s14 = sshll.u32 %s202_s6, 4  ;;  %s199_s25 = scalar_lea.sflag [#allocation6], %s198_s20  ;;  %s1041_s14 = int_to_ptr.vmem [resolvable:$true] %s209_s14 }
  0x49   : > { %s769_s11 = scalar_lea.hbm %s1007_s7, 128  ;;  %s774_s30 = scalar_lea.hbm %s1148_s1, 256 }
  0x4a   : > { %p770_p1 = scmp.ne.s32.totalorder %s1007_s7, %s769_s11  ;;  %p775_p3 = scmp.lt.s32.totalorder %s1007_s7, %s1148_s1 }
  0x4b   : > { %p776_p9 = scmp.lt.s32.totalorder %s774_s30, %s769_s11 }
  0x4c   : > { %p772_p4 = pnand %p770_p1, %p743_p7 }
  0x4d   : > { %p777_p12 = por %p776_p9, %p775_p3 }
  0x4e   : > { %p773_p6 = pneg %p772_p4 }
  0x50   : > { %p778_p13 = pnand %p777_p12, %p773_p6 }
  0x52   : > { %781 = shalt.err (!%p778_p13)
}
  0x53   : > { %s782_s13 = scalar_lea.vmem %s1041_s14, 128  ;;  %s875_s24 = smov [#allocation5]  }
  0x54   : > { %p783_p0 = scmp.ne.s32.totalorder %s1041_s14, %s782_s13  ;;  %s787_s26 = sshll.u32 %s875_s24, 4  ;;  %s788_s26 = int_to_ptr.vmem [resolvable:$false] %s787_s26 }
  0x55   : > { %s789_s8 = scalar_lea.vmem %s788_s26, 256  ;;  %p790_p10 = scmp.lt.s32.totalorder %s1041_s14, %s788_s26 }
  0x56   : > { %p785_p5 = pnand %p783_p0, %p743_p7  ;;  %p791_p1 = scmp.lt.s32.totalorder %s789_s8, %s782_s13 }
  0x58   : > { %p786_p2 = pneg %p785_p5  ;;  %p792_p4 = por %p791_p1, %p790_p10 }
  0x5a   : > { %p793_p3 = pnand %p792_p4, %p786_p2 }
  0x5c   : > { %796 = shalt.err (!%p793_p3)
}
  0x5d   : > { %657 = dma.hbm_to_vmem [thread:$0]  (!%p998_p11), %s1007_s7, 128, %s1041_s14, %s199_s25, %s1172_s5, %s1172_s5, %s1171_s2  }
  0x5e   : > { %221 = sbr.rel (%p946_p8) target bundleno = 555 (0x22b), region = 36  ;;  %s1071_s0 = sand.u32 (!%p946_p8), 1, %s861_s16  }
  0x5f   : > { %s576_s9 = sshll.u32 (!%p946_p8), %s1071_s0, 3  ;;  %s224_s6 = scalar_lea.sflag (!%p946_p8), [#allocation3], %s1071_s0 }
  0x60   : > { %s1075_s20 = scalar_lea.vmem (!%p946_p8), [#allocation2], %s576_s9  ;;  %p1173_p7 = scmp.ne.s32.totalorder (!%p946_p8), %s1161_s21, 0 }
  0x63   : > { %840 = dma.done.wait (%p1173_p7), %s224_s6, 128  }
  0x64   : > { %842 = vsyncadd (%p1173_p7), %s224_s6, 4294967168  ;;  %s232_s28 = sand.u32 1, %s927_s19   ;;  %s1082_s7 = scalar_lea.vmem [#allocation5], %s576_s9 }
  0x65   : > { %s233_s23 = scalar_lea.sflag [#allocation6], %s232_s28 }
  0x66   : > { %844 = dma.done.wait (%p1173_p7), %s233_s23, 128  }
  0x67   : > { %846 = vsyncadd (%p1173_p7), %s233_s23, 4294967168  ;;  %p1174_p8 = scmp.eq.s32.totalorder %s927_s19, 0 }
  0x69   : > { %848 = dma.done.wait (%p1174_p8), [#allocation6], 1024   ;;  %p1175_p11 = pmov %p1174_p8 }
  0x6a   : > { %v876_v0 = vmov 0.0   ;;  %vm877_vm0 = vmmov 0   ;;  %v705_v1 = vld [vmem:[#allocation7 + $0x38] sm:$0xff]   ;;  %v706_v2 = vld [vmem:[#allocation7 + $0x30] sm:$0xff]   ;;  %v707_v3 = vld [vmem:[#allocation7 + $0x28] sm:$0xff]   ;;  %vm399_vm1 = vcmask 130048  }
  0x6b   : > { %850 = vsyncadd (%p1175_p11), [#allocation6], 4294966272  ;;  %611 = vmatprep.subr.bf16.mxu0 %v876_v0  ;;  %627 = vmatprep.mubr.msk.bf16.mxu0 %vm877_vm0, %v876_v0  ;;  %v708_v4 = vld [vmem:[#allocation7 + $0x20] sm:$0xff]   ;;  %v709_v5 = vld [vmem:[#allocation7 + $0x18] sm:$0xff]   ;;  %s579_s21 = sshll.u32 %s1071_s0, 4  ;;  %s599_s11 = sshll.u32 %s927_s19, 8 }
  0x6c   : > { %631 = vmatprep.subr.bf16.mxu1 %v876_v0  ;;  %633 = vmatprep.mubr.msk.bf16.mxu1 %vm877_vm0, %v876_v0  ;;  %v710_v6 = vld [vmem:[#allocation7 + $0x10] sm:$0xff]   ;;  %v711_v7 = vld [vmem:[#allocation7 + $0x8] sm:$0xff]   ;;  %v712_v8 = vld [vmem:[#allocation7] sm:$0xff]   ;;  %s269_s14 = scalar_lea.vmem [#allocation8], %s579_s21  ;;  %s1104_s30 = scalar_lea.hbm %s1151_s4, %s599_s11 }
  0x6d   : > { %612 = vmatpush3.bf16.msra.mxu0 %v705_v1  ;;  %v713_v9 = vld [vmem:[%s1082_s7] sm:$0xff]   ;;  %v714_v15 = vld [vmem:[%s1075_s20] sm:$0xff]   ;;  %s460_s25 = sshll.u32 %s269_s14, 4  ;;  %s447_s13 = scalar_lea.sflag [#allocation4], %s1071_s0  ;;  %s1099_s25 = int_to_ptr.vmem [resolvable:$true] %s460_s25 }
  0x6e   : > { %613 = vmatprep.subr.bf16.mxu0 %v876_v0  ;;  %v589_v16 = vld [vmem:[%s1150_s3] ss:$0 sm:$0xff]  ;;  %s797_s24 = scalar_lea.vmem %s1099_s25, 256  ;;  %p1176_p9 = scmp.ne.s32.totalorder %s1168_s10, 0 }
  0x6f   : > { %p798_p6 = scmp.ne.s32.totalorder %s1099_s25, %s797_s24  ;;  %s878_s19 = smov [#allocation8]  }
  0x70   : > { %s801_s26 = sshll.u32 %s878_s19, 4  ;;  %s802_s26 = int_to_ptr.vmem [resolvable:$false] %s801_s26 }
  0x71   : > { %614 = vmatpush3.bf16.msra.mxu0 %v706_v2  ;;  %p799_p12 = pnand %p798_p6, %p1176_p9  ;;  %s803_s8 = scalar_lea.vmem %s802_s26, 512 }
  0x72   : > { %615 = vmatprep.subr.bf16.mxu0 %v876_v0  ;;  %p804_p0 = scmp.lt.s32.totalorder %s1099_s25, %s802_s26  ;;  %p805_p5 = scmp.lt.s32.totalorder %s803_s8, %s797_s24 }
  0x73   : > { %p800_p13 = pneg %p799_p12 }
  0x74   : > { %p806_p2 = por %p805_p5, %p804_p0 }
  0x75   : > { %616 = vmatpush3.bf16.msra.mxu0 %v707_v3 }
  0x76   : > { %617 = vmatprep.subr.bf16.mxu0 %v876_v0  ;;  %p807_p10 = pnand %p806_p2, %p800_p13 }
  0x79   : > { %618 = vmatpush3.bf16.msra.mxu0 %v708_v4 }
  0x7a   : > { %619 = vmatprep.subr.bf16.mxu0 %v876_v0 }
  0x7d   : > { %620 = vmatpush3.bf16.msra.mxu0 %v709_v5 }
  0x7e   : > { %621 = vmatprep.subr.bf16.mxu0 %v876_v0 }
  0x81   : > { %622 = vmatpush3.bf16.msra.mxu0 %v710_v6 }
  0x82   : > { %623 = vmatprep.subr.bf16.mxu0 %v876_v0 }
  0x85   : > { %624 = vmatpush3.bf16.msra.mxu0 %v711_v7 }
  0x86   : > { %625 = vmatprep.subr.bf16.mxu0 %v876_v0 }
  0x89   : > { %626 = vmatpush3.bf16.msra.mxu0 %v712_v8 }
  0x8c   : > { %628 = vmatmul.mubr.bf16.vlgmr.msra.gmra.mxu0 %v713_v9 }
 0x14c   : > { %v379_v10 = vpop.f32.mrf.mxu0 }
 0x14e   : > { %v629_v11 = vpop.f32.mrf.mxu0 }
 0x150   : > { %v382_v12 = vpop.f32.mrf.mxu0 }
 0x151   : > { %v386_v13 = vpack.c.bf16 %v382_v12, %v379_v10 }
 0x152   : > { %v630_v14 = vpop.f32.mrf.mxu0 }
 0x153   : > { %632 = vmatpush3.bf16.msra.mxu1 %v386_v13 }
 0x156   : > { %634 = vmatmul.mubr.msk.bf16.vlgmr.msra.gmra.mxu1 %vm399_vm1, %v714_v15 }
 0x216   : > { %v437_v17 = vpop.f32.mrf.mxu1 }
 0x217   : > { %v438_v18 = vadd.f32 %v589_v16, %v437_v17 }
 0x218   : > { %v635_v19 = vpop.f32.mrf.mxu1 }
 0x219   : > { %444 = vst [vmem:[%s269_s14] sm:$0xff] %v438_v18 }
 0x21a   : > { %v440_v20 = vpop.f32.mrf.mxu1 }
 0x21b   : > { %v441_v21 = vadd.f32 %v589_v16, %v440_v20 }
 0x21c   : > { %v636_v22 = vpop.f32.mrf.mxu1 }
 0x21d   : > { %445 = vst [vmem:[%s269_s14 + $0x8] sm:$0xff] %v441_v21 }
 0x21e   : > { %810 = shalt.err (!%p807_p10)
}
 0x21f   : > { %s811_s9 = scalar_lea.hbm %s1104_s30, 256  ;;  %s815_s28 = scalar_lea.hbm %s1151_s4, 512 }
 0x220   : > { %p812_p1 = scmp.ne.s32.totalorder %s1104_s30, %s811_s9  ;;  %p816_p7 = scmp.lt.s32.totalorder %s1104_s30, %s1151_s4 }
 0x221   : > { %p817_p8 = scmp.lt.s32.totalorder %s815_s28, %s811_s9 }
 0x222   : > { %p813_p4 = pnand %p812_p1, %p1176_p9 }
 0x223   : > { %p818_p11 = por %p817_p8, %p816_p7 }
 0x224   : > { %p814_p3 = pneg %p813_p4 }
 0x226   : > { %p819_p6 = pnand %p818_p11, %p814_p3 }
 0x228   : > { %822 = shalt.err (!%p819_p6)
}
 0x229   : > { %s879_s21 = smov 128   ;;  %s880_s2 = smov 8  }
 0x22a   : > { %645 = dma.vmem_to_hbm [thread:$0]  (%p1176_p9), %s1099_s25, 256, %s1104_s30, %s447_s13, %s879_s21, %s879_s21, %s880_s2  }
 0x22b PF: > { %s475_s5 = sand.u32 1, %s857_s15   ;;  %p1177_p12 = scmp.ne.s32.totalorder %s1162_s22, 0 }
 0x22c   : > { %p1178_p13 = scmp.ge.s32.totalorder %s869_s18, 2  ;;  %s476_s14 = scalar_lea.sflag [#allocation4], %s475_s5 }
 0x22e   : > { %p659_p0 = pnand %p1178_p13, %p1177_p12 }
 0x230   : > { %p660_p5 = pneg %p659_p0 }
 0x232   : > { %852 = dma.done.wait (%p660_p5), %s476_s14, 256  }
 0x233   : > { %854 = vsyncadd (%p660_p5), %s476_s14, 4294967040  ;;  %s1179_s11 = sld [smem:[#allocation13_spill]]  ;;  %p20_p2 = scmp.ge.s32.totalorder %s960_s27, 4  }
 0x234   : > { %s1180_s15 = smov %s861_s16  ;;  %s1181_s16 = smov %s865_s17 }
 0x235   : > { %s1183_s18 = smov %s960_s27  ;;  %22 = sbr.rel (!%p20_p2) target bundleno = 10 (0xa), region = 98 }
 0x239   : > { %s1182_s17 = smov %s1179_s11 }
 0x23a   :  { %481 = vsyncpa [#allocation3], 1 }
 0x23b   :  { %483 = vsyncpa [#allocation3 + $0x1], 1 }
 0x23c   :  { %484 = vsyncpa [#allocation6], 1 }
 0x23d   :  { %486 = vsyncpa [#allocation6 + $0x1], 1 }
 0x23e   :  { %487 = vsyncpa [#allocation4], 1 }
 0x23f   :  { %489 = vsyncpa [#allocation4 + $0x1], 1 }

</bundles_post_ra>
